<compile_context>
chip_gen: v7x
topology: tpu7x:2x2x1
jax: 0.10.0
libtpu: 0.0.40
codegen_flags: <defaults>
</compile_context>

<pallas_src>
import functools

import jax
import jax.numpy as jnp
from jax import lax
from jax.experimental import pallas as pl
from jax.experimental.pallas import tpu as pltpu


def _sg_compute(s_n, k, v, slots_out_ref, dots_ref, acc_ref, den_ref,
                *, inv_temp, eps):
    # s_n: (K, D) pre-normalized slots; k, v: (D, tn); outputs per (b, n) tile.
    n_idx = pl.program_id(1)

    # L2-normalize key over channels (sublane axis). rsqrt -> EUP slot.
    inv_knorm = lax.rsqrt(
        jnp.maximum(jnp.sum(k * k, axis=0, keepdims=True), 1e-24))  # (1, tn)
    k_n = k * inv_knorm

    # dots[k, n] = <s_n[k, :], k_n[:, n]>  -> (K, tn). Standard MXU matmul.
    dots = lax.dot_general(
        s_n, k_n,
        dimension_numbers=(((1,), (0,)), ((), ())),
        preferred_element_type=jnp.float32)
    dots_ref[0] = dots

    # Softmax over the slot axis K (axis 0), numerically stable.
    logits = dots * inv_temp
    m = jnp.max(logits, axis=0, keepdims=True)
    e = jnp.exp(logits - m)
    attn = e * pl.reciprocal(jnp.sum(e, axis=0, keepdims=True),
                             approx=False) + eps                      # (K, tn)

    @pl.when(n_idx == 0)
    def _init():
        acc_ref[...] = jnp.zeros_like(acc_ref)
        den_ref[...] = jnp.zeros_like(den_ref)

    # Accumulate attention mass over N and the weighted sum of val over N.
    den_ref[...] += jnp.sum(attn, axis=1, keepdims=True)              # (K, 1)
    acc_ref[...] += lax.dot_general(                                  # (K, D)
        attn, v,
        dimension_numbers=(((1,), (1,)), ((), ())),
        preferred_element_type=jnp.float32)

    @pl.when(n_idx == pl.num_programs(1) - 1)
    def _finalize():
        slots_out_ref[0] = acc_ref[...] * pl.reciprocal(den_ref[...],
                                                        approx=False)


def _sg_kernel_shared(slots_ref, key_ref, slots_out_ref, dots_ref,
                      acc_ref, den_ref, *, inv_temp, eps):
    # val is key: reuse the single DMA'd tile for both matmuls.
    k = key_ref[0]
    _sg_compute(slots_ref[...], k, k, slots_out_ref, dots_ref,
                acc_ref, den_ref, inv_temp=inv_temp, eps=eps)


def _sg_kernel_separate(slots_ref, key_ref, val_ref, slots_out_ref, dots_ref,
                        acc_ref, den_ref, *, inv_temp, eps):
    _sg_compute(slots_ref[...], key_ref[0], val_ref[0], slots_out_ref, dots_ref,
                acc_ref, den_ref, inv_temp=inv_temp, eps=eps)


def _pick_block_n(n, target=2048):
    """Largest lane-dense (multiple-of-128) divisor of n not exceeding target,
    or n itself when n is small / has no such divisor."""
    if n <= target:
        return n
    t = (target // 128) * 128
    while t >= 128:
        if n % t == 0:
            return t
        t -= 128
    return n


def semantic_grouping(slot_embed, key, val=None, temp=0.07, eps=1e-07,
                      block_n=2048):
    """slot_embed: (K, D) f32; key/val: (B, D, H, W) f32 (NCHW).
    Returns (slots (B,K,D), dots (B,K,H,W)) matching the PyTorch forward."""
    B, D, H, W = key.shape
    K = slot_embed.shape[0]
    N = H * W

    # NCHW -> (B, D, N): pure reshape, no HBM transpose.
    key_dn = key.reshape(B, D, N)
    share_val = val is None
    val_dn = None if share_val else val.reshape(B, D, N)

    # Hoist slot normalization out of the per-batch grid (batch-independent).
    # Matches F.normalize(slots, dim=2) with default eps=1e-12.
    s_n = slot_embed / jnp.maximum(
        jnp.linalg.norm(slot_embed, axis=-1, keepdims=True), 1e-12)

    tn = _pick_block_n(N, block_n)
    grid = (B, N // tn)

    kernel = functools.partial(
        _sg_kernel_shared if share_val else _sg_kernel_separate,
        inv_temp=1.0 / float(temp), eps=float(eps))

    slots_spec = pl.BlockSpec((K, D), lambda b, n: (0, 0))
    kv_spec = pl.BlockSpec((1, D, tn), lambda b, n: (b, 0, n))
    in_specs = [slots_spec, kv_spec] if share_val else [slots_spec, kv_spec, kv_spec]
    inputs = (s_n, key_dn) if share_val else (s_n, key_dn, val_dn)

    # NOTE: for production-sized N/D on v7x, set
    # pltpu.CompilerParams(vmem_limit_bytes=...) with headroom under 64 MiB
    # when enlarging block_n; defaults are plenty for these shapes.
    slots_out, dots = pl.pallas_call(
        kernel,
        out_shape=(
            jax.ShapeDtypeStruct((B, K, D), jnp.float32),
            jax.ShapeDtypeStruct((B, K, N), jnp.float32),
        ),
        grid_spec=pltpu.PrefetchScalarGridSpec(
            num_scalar_prefetch=0,
            grid=grid,
            in_specs=in_specs,
            out_specs=[
                pl.BlockSpec((1, K, D), lambda b, n: (b, 0, 0)),
                pl.BlockSpec((1, K, tn), lambda b, n: (b, 0, n)),
            ],
            scratch_shapes=[
                pltpu.VMEM((K, D), jnp.float32),   # weighted-sum numerator
                pltpu.VMEM((K, 1), jnp.float32),   # attention-mass denominator
            ]),
        compiler_params=pltpu.CompilerParams(
            dimension_semantics=("parallel", "arbitrary")),
    )(*inputs)

    return slots_out, dots.reshape(B, K, H, W)


def _reference(slot_embed, key, val=None, temp=0.07, eps=1e-07):
    # Pure-JAX reference mirroring the PyTorch forward, for verification.
    if val is None:
        val = key
    B = key.shape[0]
    slots = jnp.broadcast_to(slot_embed[None], (B,) + slot_embed.shape)
    s_n = slots / jnp.maximum(jnp.linalg.norm(slots, axis=2, keepdims=True), 1e-12)
    k_n = key / jnp.maximum(jnp.linalg.norm(key, axis=1, keepdims=True), 1e-12)
    dots = jnp.einsum('bkd,bdhw->bkhw', s_n, k_n)
    attn = jax.nn.softmax(dots / temp, axis=1) + eps
    attn_w = attn / jnp.sum(attn, axis=(2, 3), keepdims=True)
    slots_out = jnp.einsum('bdhw,bkhw->bkd', val, attn_w)
    return slots_out, dots


if __name__ == "__main__":
    B, D, H, W = 2, 32, 8, 8     # dim_slot = 32
    K = 8                        # num_slots

    rng = jax.random.PRNGKey(0)
    k_embed, k_key, k_val = jax.random.split(rng, 3)
    # nn.Embedding default init: N(0, 1)
    slot_embed = jax.random.normal(k_embed, (K, D), dtype=jnp.float32)
    key = jax.random.normal(k_key, (B, D, H, W), dtype=jnp.float32)
    val = jax.random.normal(k_val, (B, D, H, W), dtype=jnp.float32)

    # Path 1: val defaults to key (deduplicated single input).
    slots_out, dots = semantic_grouping(slot_embed, key)
    jax.block_until_ready((slots_out, dots))
    ref_slots, ref_dots = _reference(slot_embed, key)
    assert slots_out.shape == (B, K, D) and dots.shape == (B, K, H, W)
    assert jnp.allclose(slots_out, ref_slots, atol=2e-5, rtol=2e-5)
    assert jnp.allclose(dots, ref_dots, atol=2e-5, rtol=2e-5)

    # Path 2: explicit separate val.
    slots_out2, dots2 = semantic_grouping(slot_embed, key, val)
    jax.block_until_ready((slots_out2, dots2))
    ref_slots2, ref_dots2 = _reference(slot_embed, key, val)
    assert jnp.allclose(slots_out2, ref_slots2, atol=2e-5, rtol=2e-5)
    assert jnp.allclose(dots2, ref_dots2, atol=2e-5, rtol=2e-5)

    print("KERNEL_OK")
</pallas_src>

<mosaic_0001>
module attributes {stable_mosaic.version = 11 : i64} {
  func.func @_sg_kernel_shared(%arg0: i32, %arg1: i32, %arg2: memref<8x32xf32, #tpu.memory_space<vmem>>, %arg3: memref<1x32x64xf32, #tpu.memory_space<vmem>>, %arg4: memref<1x8x32xf32, #tpu.memory_space<vmem>>, %arg5: memref<1x8x64xf32, #tpu.memory_space<vmem>>, %arg6: memref<8x32xf32, #tpu.memory_space<vmem>>, %arg7: memref<8x1xf32, #tpu.memory_space<vmem>>) attributes {dimension_semantics = [#tpu.dimension_semantics<parallel>, #tpu.dimension_semantics<arbitrary>], iteration_bounds = array<i64: 2, 1>, scalar_prefetch = 0 : i64, scratch_operands = 2 : i64, tpu.core_type = #tpu.core_type<tc>, window_params = [{pipeline_mode = #tpu.pipeline_mode<synchronous>, transform_indices = @transform_0, window_bounds = array<i64: 8, 32>}, {transform_indices = @transform_1, window_bounds = array<i64: 1, 32, 64>}, {transform_indices = @transform_2, window_bounds = array<i64: 1, 8, 32>}, {transform_indices = @transform_3, window_bounds = array<i64: 1, 8, 64>}]} {
    %c0 = arith.constant 0 : index
    %c0_0 = arith.constant 0 : index
    %c0_1 = arith.constant 0 : index
    %0 = vector.load %arg3[%c0, %c0_0, %c0_1] : memref<1x32x64xf32, #tpu.memory_space<vmem>>, vector<1x32x64xf32>
    %1 = vector.shape_cast %0 : vector<1x32x64xf32> to vector<32x64xf32>
    %c0_2 = arith.constant 0 : index
    %c0_3 = arith.constant 0 : index
    %2 = vector.load %arg2[%c0_2, %c0_3] : memref<8x32xf32, #tpu.memory_space<vmem>>, vector<8x32xf32>
    %3 = arith.mulf %1, %1 : vector<32x64xf32>
    %cst = arith.constant dense<0.000000e+00> : vector<64xf32>
    %4 = vector.multi_reduction <add>, %3, %cst [0] : vector<32x64xf32> to vector<64xf32>
    %5 = vector.shape_cast %4 : vector<64xf32> to vector<1x64xf32>
    %cst_4 = arith.constant 1.000000e-24 : f32
    %6 = vector.broadcast %cst_4 : f32 to vector<1x64xf32>
    %7 = arith.maximumf %5, %6 : vector<1x64xf32>
    %8 = math.rsqrt %7 : vector<1x64xf32>
    %9 = vector.broadcast %8 : vector<1x64xf32> to vector<32x64xf32>
    %10 = arith.mulf %1, %9 : vector<32x64xf32>
    %cst_5 = arith.constant dense<0.000000e+00> : vector<8x64xf32>
    %11 = tpu.matmul %2, %10, %cst_5 {dimension_numbers = #tpu.dot_dimension_numbers<[1], [0], [0], [1], [0, 0, 1, 1], [], []>} : vector<8x32xf32>, vector<32x64xf32>, vector<8x64xf32> -> vector<8x64xf32>
    %c0_6 = arith.constant 0 : index
    %c0_7 = arith.constant 0 : index
    %c0_8 = arith.constant 0 : index
    %12 = vector.load %arg5[%c0_6, %c0_7, %c0_8] : memref<1x8x64xf32, #tpu.memory_space<vmem>>, vector<1x8x64xf32>
    %13 = vector.shape_cast %12 : vector<1x8x64xf32> to vector<8x64xf32>
    %14 = vector.shape_cast %11 : vector<8x64xf32> to vector<1x8x64xf32>
    tpu.vector_store %arg5[%c0_6, %c0_7, %c0_8], %14 {strides = array<i32>} : memref<1x8x64xf32, #tpu.memory_space<vmem>>, vector<1x8x64xf32>,
    %cst_9 = arith.constant 14.2857141 : f32
    %15 = vector.broadcast %cst_9 : f32 to vector<8x64xf32>
    %16 = arith.mulf %11, %15 : vector<8x64xf32>
    %cst_10 = arith.constant dense<0xFF800000> : vector<64xf32>
    %17 = vector.multi_reduction <maximumf>, %16, %cst_10 [0] : vector<8x64xf32> to vector<64xf32>
    %18 = vector.shape_cast %17 : vector<64xf32> to vector<1x64xf32>
    %19 = vector.broadcast %18 : vector<1x64xf32> to vector<8x64xf32>
    %20 = arith.subf %16, %19 : vector<8x64xf32>
    %21 = math.exp %20 : vector<8x64xf32>
    %cst_11 = arith.constant dense<0.000000e+00> : vector<64xf32>
    %22 = vector.multi_reduction <add>, %21, %cst_11 [0] : vector<8x64xf32> to vector<64xf32>
    %23 = vector.shape_cast %22 : vector<64xf32> to vector<1x64xf32>
    %24 = tpu.reciprocal %23 : vector<1x64xf32> -> vector<1x64xf32>
    %25 = vector.broadcast %24 : vector<1x64xf32> to vector<8x64xf32>
    %26 = arith.mulf %21, %25 : vector<8x64xf32>
    %cst_12 = arith.constant 1.000000e-07 : f32
    %27 = vector.broadcast %cst_12 : f32 to vector<8x64xf32>
    %28 = arith.addf %26, %27 : vector<8x64xf32>
    %c0_i32 = arith.constant 0 : i32
    %29 = arith.cmpi eq, %arg1, %c0_i32 : i32
    %30 = arith.extui %29 : i1 to i32
    %c0_i32_13 = arith.constant 0 : i32
    %31 = arith.cmpi ne, %30, %c0_i32_13 : i32
    scf.if %31 {
      %cst_26 = arith.constant 0.000000e+00 : f32
      %44 = vector.broadcast %cst_26 : f32 to vector<8x32xf32>
      %c0_27 = arith.constant 0 : index
      %c0_28 = arith.constant 0 : index
      %45 = vector.load %arg6[%c0_27, %c0_28] : memref<8x32xf32, #tpu.memory_space<vmem>>, vector<8x32xf32>
      tpu.vector_store %arg6[%c0_27, %c0_28], %44 {strides = array<i32>} : memref<8x32xf32, #tpu.memory_space<vmem>>, vector<8x32xf32>,
      %cst_29 = arith.constant 0.000000e+00 : f32
      %46 = vector.broadcast %cst_29 : f32 to vector<8x1xf32>
      %c0_30 = arith.constant 0 : index
      %c0_31 = arith.constant 0 : index
      %47 = vector.load %arg7[%c0_30, %c0_31] : memref<8x1xf32, #tpu.memory_space<vmem>>, vector<8x1xf32>
      tpu.vector_store %arg7[%c0_30, %c0_31], %46 {strides = array<i32>} : memref<8x1xf32, #tpu.memory_space<vmem>>, vector<8x1xf32>,
    } else {
    }
    %c0_14 = arith.constant 0 : index
    %c0_15 = arith.constant 0 : index
    %32 = vector.load %arg7[%c0_14, %c0_15] : memref<8x1xf32, #tpu.memory_space<vmem>>, vector<8x1xf32>
    %cst_16 = arith.constant dense<0.000000e+00> : vector<8xf32>
    %33 = vector.multi_reduction <add>, %28, %cst_16 [1] : vector<8x64xf32> to vector<8xf32>
    %34 = vector.shape_cast %33 : vector<8xf32> to vector<8x1xf32>
    %35 = arith.addf %32, %34 : vector<8x1xf32>
    %c0_17 = arith.constant 0 : index
    %c0_18 = arith.constant 0 : index
    %36 = vector.load %arg7[%c0_17, %c0_18] : memref<8x1xf32, #tpu.memory_space<vmem>>, vector<8x1xf32>
    tpu.vector_store %arg7[%c0_17, %c0_18], %35 {strides = array<i32>} : memref<8x1xf32, #tpu.memory_space<vmem>>, vector<8x1xf32>,
    %c0_19 = arith.constant 0 : index
    %c0_20 = arith.constant 0 : index
    %37 = vector.load %arg6[%c0_19, %c0_20] : memref<8x32xf32, #tpu.memory_space<vmem>>, vector<8x32xf32>
    %cst_21 = arith.constant dense<0.000000e+00> : vector<8x32xf32>
    %38 = tpu.matmul %28, %1, %cst_21 {dimension_numbers = #tpu.dot_dimension_numbers<[1], [1], [0], [0], [0, 0, 1, 0], [], []>} : vector<8x64xf32>, vector<32x64xf32>, vector<8x32xf32> -> vector<8x32xf32>
    %39 = arith.addf %37, %38 : vector<8x32xf32>
    %c0_22 = arith.constant 0 : index
    %c0_23 = arith.constant 0 : index
    %40 = vector.load %arg6[%c0_22, %c0_23] : memref<8x32xf32, #tpu.memory_space<vmem>>, vector<8x32xf32>
    tpu.vector_store %arg6[%c0_22, %c0_23], %39 {strides = array<i32>} : memref<8x32xf32, #tpu.memory_space<vmem>>, vector<8x32xf32>,
    %c0_i32_24 = arith.constant 0 : i32
    %41 = arith.cmpi eq, %arg1, %c0_i32_24 : i32
    %42 = arith.extui %41 : i1 to i32
    %c0_i32_25 = arith.constant 0 : i32
    %43 = arith.cmpi ne, %42, %c0_i32_25 : i32
    scf.if %43 {
      %c0_26 = arith.constant 0 : index
      %c0_27 = arith.constant 0 : index
      %44 = vector.load %arg6[%c0_26, %c0_27] : memref<8x32xf32, #tpu.memory_space<vmem>>, vector<8x32xf32>
      %c0_28 = arith.constant 0 : index
      %c0_29 = arith.constant 0 : index
      %45 = vector.load %arg7[%c0_28, %c0_29] : memref<8x1xf32, #tpu.memory_space<vmem>>, vector<8x1xf32>
      %46 = tpu.reciprocal %45 : vector<8x1xf32> -> vector<8x1xf32>
      %47 = vector.broadcast %46 : vector<8x1xf32> to vector<8x32xf32>
      %48 = arith.mulf %44, %47 : vector<8x32xf32>
      %c0_30 = arith.constant 0 : index
      %c0_31 = arith.constant 0 : index
      %c0_32 = arith.constant 0 : index
      %49 = vector.load %arg4[%c0_30, %c0_31, %c0_32] : memref<1x8x32xf32, #tpu.memory_space<vmem>>, vector<1x8x32xf32>
      %50 = vector.shape_cast %49 : vector<1x8x32xf32> to vector<8x32xf32>
      %51 = vector.shape_cast %48 : vector<8x32xf32> to vector<1x8x32xf32>
      tpu.vector_store %arg4[%c0_30, %c0_31, %c0_32], %51 {strides = array<i32>} : memref<1x8x32xf32, #tpu.memory_space<vmem>>, vector<1x8x32xf32>,
    } else {
    }
    return
  }
  func.func @transform_0(%arg0: i32, %arg1: i32) -> (i32, i32) {
    %c0_i32 = arith.constant 0 : i32
    %c0_i32_0 = arith.constant 0 : i32
    %c0_i32_1 = arith.constant 0 : i32
    return %c0_i32, %c0_i32_0 : i32, i32
  }
  func.func @transform_1(%arg0: i32, %arg1: i32) -> (i32, i32, i32) {
    %c0_i32 = arith.constant 0 : i32
    %c0_i32_0 = arith.constant 0 : i32
    return %arg0, %c0_i32, %arg1 : i32, i32, i32
  }
  func.func @transform_2(%arg0: i32, %arg1: i32) -> (i32, i32, i32) {
    %c0_i32 = arith.constant 0 : i32
    %c0_i32_0 = arith.constant 0 : i32
    %c0_i32_1 = arith.constant 0 : i32
    return %arg0, %c0_i32, %c0_i32_0 : i32, i32, i32
  }
  func.func @transform_3(%arg0: i32, %arg1: i32) -> (i32, i32, i32) {
    %c0_i32 = arith.constant 0 : i32
    %c0_i32_0 = arith.constant 0 : i32
    return %arg0, %c0_i32, %arg1 : i32, i32, i32
  }
}

</mosaic_0001>

<bundles_post_ra>
// kernel: tpu_custom_call.1
= control target key start
LH: loop header
LB: loop body
LE: loop exit
PB: predicated region body
PF: predicated region fallthrough
CT: control target
= control target key end

     0   :  { %9 = vsyncpa [#allocation5], 0  ;;  %s1273_s0 = inlined_call_operand.hbm [shape: f32[8,32], index: 0, kind: input, shape index: {}]   ;;  %s1274_s1 = inlined_call_operand.hbm [shape: f32[2,32,64], index: 1, kind: input, shape index: {}]   ;;  %s1275_s2 = inlined_call_operand.hbm [shape: f32[2,8,32], index: 2, kind: output, shape index: {0}]   ;;  %s1276_s3 = inlined_call_operand.hbm [shape: f32[2,8,64], index: 3, kind: output, shape index: {1}]  }
   0x1   :  { %10 = vsyncpa [#allocation8], 0 }
   0x2   :  { %12 = vsyncpa [#allocation8 + $0x1], 0 }
   0x3   :  { %13 = vsyncpa [#allocation6], 0 }
   0x4   :  { %15 = vsyncpa [#allocation6 + $0x1], 0 }
   0x5   :  { %16 = vsyncpa [#allocation11], 0 }
   0x6   :  { %18 = vsyncpa [#allocation11 + $0x1], 0  ;;  %s1001_s12 = smov 0   ;;  %s1003_s13 = smov 0  }
   0x7   :  { %s1005_s14 = smov 0   ;;  %s1007_s15 = smov 0  }
   0x8   :  { %s1009_s16 = smov 0   ;;  %s1011_s17 = smov 0  }
   0x9 LB: > { %s628_s18 = sadd.s32 4294967295, %s969_s17   ;;  %s629_s19 = sadd.s32 4294967294, %s969_s17   ;;  %s969_s17 = sphi %s1011_s17, %s24_s17   ;;  %s965_s16 = sphi %s1009_s16, %s1304_s16   ;;  %s961_s15 = sphi %s1007_s15, %s1303_s15   ;;  %s957_s14 = sphi %s1005_s14, %s1302_s14   ;;  %s953_s13 = sphi %s1003_s13, %s1301_s13   ;;  %s949_s12 = sphi %s1001_s12, %s1300_s12  }
   0xa   : > { %s66_s20 = sadd.s32 1, %s957_s14  ;;  %p73_p0 = scmp.ne.s32.totalorder %s957_s14, %s953_s13 }
   0xb   : > { %p74_p1 = scmp.eq.s32.totalorder %s969_s17, 0  ;;  %p79_p2 = scmp.ne.s32.totalorder %s953_s13, %s949_s12 }
   0xc   : > { %p1039_p3 = scmp.eq.s32.totalorder %s628_s18, 0  ;;  %p103_p4 = scmp.eq.s32.totalorder %s628_s18, 1 }
   0xd   : > { %p1043_p5 = por %p74_p1, %p73_p0  ;;  %p109_p6 = scmp.eq.s32.totalorder %s629_s19, 1 }
   0xe   : > { %s1283_s21 = scalar_select %p1039_p3, 1, 0 }
   0xf   : > { %p1049_p7 = por %p1039_p3, %p79_p2  ;;  %p1053_p8 = por %p103_p4, %p73_p0 }
  0x10   : > { %p1057_p9 = por %p109_p6, %p79_p2  ;;  %p630_p10 = scmp.ge.s32.totalorder %s969_s17, 1 }
  0x11   : > { %s1285_s23 = scalar_select %p1049_p7, 1, 0 }
  0x12   : > { %s1286_s24 = scalar_select %p1053_p8, 1, 0 }
  0x13   : > { %s1287_s25 = scalar_select %p1057_p9, 1, 0 }
  0x14   : > { %p144_p11 = scmp.lt.s32.totalorder %s969_s17, 3  ;;  %s971_s27 = smov [#allocation4]  }
  0x15   : > { %s157_s28 = sshll.u32 %s971_s27, 4  ;;  %p726_p1 = scmp.lt.s32.totalorder %s969_s17, 2  ;;  %s158_s28 = int_to_ptr.vmem [resolvable:$true] %s157_s28 }
  0x16   : > { %p1064_p13 = pnand %p630_p10, %p144_p11  ;;  %s36_s4 = sadd.s32 1, %s965_s16 }
  0x17   : > { %p1073_p4 = pnand %p726_p1, %p1043_p5  ;;  %p1084_p6 = scmp.ge.s32.totalorder %s36_s4, 2 }
  0x18   : > { %s1288_s26 = scalar_select %p1064_p13, 1, 0 }
  0x19   : > { %p710_p0 = pneg %p1064_p13  ;;  %s168_s6 = sand.u32 1, %s957_s14  }
  0x1a   : > { %s1289_s29 = scalar_select %p1073_p4, 1, 0 }
  0x1b   : > { %p1079_p2 = pnand %p710_p0, %p1039_p3  ;;  %s793_s9 = scalar_lea.hbm %s1273_s0, 128 }
  0x1c   : > { %s1291_s5 = scalar_select %p1084_p6, 1, 0 }
  0x1d   : > { %p794_p5 = scmp.ne.s32.totalorder %s1273_s0, %s793_s9  ;;  %p795_p10 = pneg %p1079_p2 }
  0x1e   : > { %p800_p0 = scmp.lt.u32.totalorder %s793_s9, %s1273_s0 }
  0x1f   : > { %p796_p11 = pnand %p795_p10, %p794_p5 }
  0x21   : > { %p797_p1 = pneg %p796_p11 }
  0x23   : > { %p802_p12 = pnand %p800_p0, %p797_p1 }
  0x25   : > { %805 = shalt.err (!%p802_p12)
}
  0x26   : > { %s806_s22 = scalar_lea.vmem %s158_s28, 128  ;;  %p814_p3 = scmp.lt.s32.totalorder %s158_s28, %s158_s28 }
  0x27   : > { %p807_p9 = scmp.ne.s32.totalorder %s158_s28, %s806_s22  ;;  %p815_p13 = scmp.lt.s32.totalorder %s806_s22, %s806_s22 }
  0x29   : > { %p809_p8 = pnand %p807_p9, %p795_p10  ;;  %p816_p4 = por %p815_p13, %p814_p3 }
  0x2b   : > { %p810_p7 = pneg %p809_p8 }
  0x2d   : > { %p817_p6 = pnand %p816_p4, %p810_p7 }
  0x2f   : > { %820 = shalt.err (!%p817_p6)
}
  0x30   : > { %713 = dma.hbm_to_vmem [thread:$0]  (!%p1079_p2), %s1273_s0, 128, %s158_s28, [#allocation5]  }
  0x31   : > { %p1292_p9 = scmp.ne.s32.totalorder %s1291_s5, 0  ;;  %s633_s8 = sshll.u32 %s168_s6, 5 }
  0x32   : > { %s653_s10 = sshll.u32 %s965_s16, 9  ;;  %s172_s19 = scalar_lea.vmem [#allocation7], %s633_s8 }
  0x33   : > { %s1306_s4 = smov (%p1292_p9, %s36_s4), 0  ;;  %s1115_s18 = scalar_lea.hbm %s1274_s1, %s653_s10 }
  0x34   : > { %s61_s9 = ssub.s32 %s965_s16, %s1306_s4  ;;  %s180_s22 = sshll.u32 %s172_s19, 4  ;;  %s1122_s22 = int_to_ptr.vmem [resolvable:$true] %s180_s22 }
  0x35   : > { %p64_p3 = scmp.eq.s32.totalorder %s61_s9, 0  ;;  %s1124_s5 = scalar_lea.sflag [#allocation8], %s168_s6 }
  0x36   : > { %s821_s27 = scalar_lea.hbm %s1115_s18, 512  ;;  %p1293_p8 = scmp.ne.s32.totalorder %s1289_s29, 0 }
  0x37   : > { %s1120_s28 = scalar_select %p64_p3, %s957_s14, %s66_s20  }
  0x38   : > { %p822_p7 = scmp.ne.s32.totalorder %s1115_s18, %s821_s27  ;;  %p823_p12 = pneg %p1293_p8 }
  0x39   : > { %s826_s8 = scalar_lea.hbm %s1274_s1, 1024  ;;  %p827_p2 = scmp.lt.u32.totalorder %s1115_s18, %s1274_s1 }
  0x3a   : > { %p824_p13 = pnand %p823_p12, %p822_p7  ;;  %p828_p6 = scmp.lt.u32.totalorder %s826_s8, %s821_s27 }
  0x3b   : > { %p830_p10 = scmp.lt.u32.totalorder %s821_s27, %s1115_s18 }
  0x3c   : > { %p825_p4 = pneg %p824_p13  ;;  %p829_p5 = por %p828_p6, %p827_p2 }
  0x3e   : > { %p831_p11 = por %p830_p10, %p829_p5 }
  0x40   : > { %p832_p1 = pnand %p831_p11, %p825_p4 }
  0x42   : > { %835 = shalt.err (!%p832_p1)
}
  0x43   : > { %s836_s20 = scalar_lea.vmem %s1122_s22, 512  ;;  %s972_s6 = smov [#allocation7]  }
  0x44   : > { %p837_p0 = scmp.ne.s32.totalorder %s1122_s22, %s836_s20  ;;  %s841_s11 = sshll.u32 %s972_s6, 4  ;;  %s842_s11 = int_to_ptr.vmem [resolvable:$false] %s841_s11 }
  0x45   : > { %s843_s19 = scalar_lea.vmem %s842_s11, 1024  ;;  %p844_p7 = scmp.lt.s32.totalorder %s1122_s22, %s842_s11 }
  0x46   : > { %p839_p9 = pnand %p837_p0, %p823_p12  ;;  %p845_p13 = scmp.lt.s32.totalorder %s843_s19, %s836_s20 }
  0x48   : > { %p840_p3 = pneg %p839_p9  ;;  %p846_p2 = por %p845_p13, %p844_p7 }
  0x4a   : > { %p847_p6 = pnand %p846_p2, %p840_p3 }
  0x4c   : > { %850 = shalt.err (!%p847_p6)
}
  0x4d   : > { %s973_s27 = smov 128   ;;  %s974_s7 = smov 8  }
  0x4e   : > { %717 = dma.hbm_to_vmem [thread:$0]  (!%p1293_p8), %s1115_s18, 512, %s1122_s22, %s1124_s5, %s973_s27, %s973_s27, %s974_s7  }
  0x4f   : > { %p1294_p12 = scmp.ne.s32.totalorder %s1288_s26, 0 }
  0x50   : > { %p1295_p4 = scmp.ne.s32.totalorder (!%p1294_p12), %s1283_s21, 0 }
  0x51   : > { %192 = sbr.rel (%p1294_p12) target bundleno = 718 (0x2ce), region = 28 }
  0x58   : > { %932 = dma.done.wait (%p1295_p4), [#allocation5], 128  }
  0x59   : > { %934 = vsyncadd (%p1295_p4), [#allocation5], 4294967168  ;;  %s1159_s9 = sand.u32 1, %s953_s13   ;;  %p1296_p5 = scmp.ne.s32.totalorder %s1285_s23, 0 }
  0x5a   : > { %s638_s8 = sshll.u32 %s1159_s9, 5  ;;  %s199_s10 = scalar_lea.sflag [#allocation8], %s1159_s9 }
  0x5b   : > { %s202_s30 = scalar_lea.vmem [#allocation7], %s638_s8 }
  0x5c   : > { %936 = dma.done.wait (%p1296_p5), %s199_s10, 512  }
  0x5d   : > { %938 = vsyncadd (%p1296_p5), %s199_s10, 4294966784  ;;  %v975_v0 = vmov 0.0|0.0   ;;  %vm976_vm0 = vmmov 0   ;;  %v977_v1 = vmov 0.0   ;;  %vm360_vm1 = vcmask 7168   ;;  %v230_v2 = vld [vmem:[%s202_s30] sm:$0xff] }
  0x5e   : > { %686 = vmatprep.subr.bf16.mxu0 %v975_v0  ;;  %672 = vmatprep.mubr.msk.f32.mxu0 %vm976_vm0, %v977_v1  ;;  %vm259_vm2 = vcmask 261120   ;;  %361 = vst.msk [vmem:[#allocation3] sm:$0xff] %vm360_vm1, %v977_v1  ;;  %v231_v3 = vld [vmem:[%s202_s30 + $0x8] sm:$0xff]  ;;  %v232_v4 = vld [vmem:[%s202_s30 + $0x10] sm:$0xff]  ;;  %vm239_vm3 = vcmask 523264   ;;  %v233_v5 = vld [vmem:[%s202_s30 + $0x18] sm:$0xff]  ;;  %v235_v6 = vmul.f32 %v230_v2, %v230_v2 }
  0x5f   : > { %359 = vst.msk [vmem:[#allocation2] sm:$0xff] %vm259_vm2, %v977_v1  ;;  %692 = vmatprep.subr.bf16.mxu1 %v975_v0  ;;  %683 = vmatprep.mubr.msk.f32.mxu1 %vm976_vm0, %v977_v1  ;;  %v236_v7 = vmul.f32 %v231_v3, %v231_v3  ;;  %v237_v8 = vmul.f32 %v232_v4, %v232_v4  ;;  %v234_v31 = vld [vmem:[#allocation4] sm:$0xff]  ;;  %vm694_vm4 = vmpackc.low %vm239_vm3, %vm239_vm3  ;;  %s639_s21 = sshll.u32 %s1159_s9, 3  ;;  %v978_v58 = vmov 0   ;;  %s649_s26 = sshll.u32 %s961_s15, 7 }
  0x60   : > { %v238_v9 = vmul.f32 %v233_v5, %v233_v5  ;;  %v240_v10 = vsel %vm239_vm3, %v235_v6, 0.0  ;;  %v693_v32 = vpack.c.bf16 %v231_v3, %v230_v2  ;;  %v697_v33 = vpack.c.bf16 %v233_v5, %v232_v4  ;;  %s1179_s23 = scalar_lea.vmem [#allocation10], %s639_s21  ;;  %784 = vset.pattern.permute.xlu0 %v978_v58  ;;  %s1194_s22 = scalar_lea.hbm %s1276_s3, %s649_s26 }
  0x61   : > { %v241_v11 = vsel %vm239_vm3, %v236_v7, 0.0  ;;  %v243_v12 = vsel %vm239_vm3, %v237_v8, 0.0  ;;  %s503_s5 = sshll.u32 %s1179_s23, 4  ;;  %s476_s20 = scalar_lea.sflag [#allocation11], %s1159_s9  ;;  %s504_s5 = int_to_ptr.vmem [resolvable:$true] %s503_s5 }
  0x62   : > { %v242_v13 = vadd.f32 %v241_v11, %v240_v10  ;;  %v245_v14 = vsel %vm239_vm3, %v238_v9, 0.0  ;;  %695 = vmatpush3.bf16.xpose.msk.msra.mxu1 %vm694_vm4, %v693_v32  ;;  %s851_s6 = scalar_lea.vmem %s504_s5, 128  ;;  %p1297_p10 = scmp.ne.s32.totalorder %s1286_s24, 0 }
  0x63   : > { %696 = vmatprep.subr.bf16.mxu1 %v975_v0  ;;  %p852_p8 = scmp.ne.s32.totalorder %s504_s5, %s851_s6  ;;  %s979_s11 = smov [#allocation10]  }
  0x64   : > { %v244_v15 = vadd.f32 %v243_v12, %v242_v13  ;;  %s855_s19 = sshll.u32 %s979_s11, 4  ;;  %s856_s19 = int_to_ptr.vmem [resolvable:$false] %s855_s19 }
  0x65   : > { %v362_v59 = vld [vmem:[#allocation3] sm:$0xff]  ;;  %p853_p11 = pnand %p852_p8, %p1297_p10  ;;  %s857_s27 = scalar_lea.vmem %s856_s19, 256 }
  0x66   : > { %v246_v16 = vadd.f32 %v245_v14, %v244_v15  ;;  %p858_p0 = scmp.lt.s32.totalorder %s504_s5, %s856_s19  ;;  %p859_p9 = scmp.lt.s32.totalorder %s857_s27, %s851_s6 }
  0x67   : > { %p854_p1 = pneg %p853_p11 }
  0x68   : > { %v247_v17 = vrot.slane %v246_v16, 4  ;;  %p860_p3 = por %p859_p9, %p858_p0 }
  0x6a   : > { %v248_v18 = vadd.f32 %v247_v17, %v246_v16  ;;  %699 = vmatpush3.bf16.xpose.msk.msra.mxu1 %vm694_vm4, %v697_v33  ;;  %p861_p7 = pnand %p860_p3, %p854_p1 }
  0x6c   : > { %v249_v19 = vrot.slane %v248_v18, 2 }
  0x6e   : > { %v250_v20 = vadd.f32 %v249_v19, %v248_v18 }
  0x70   : > { %v251_v21 = vrot.slane %v250_v20, 1 }
  0x72   : > { %v252_v22 = vadd.f32 %v251_v21, %v250_v20 }
  0x74   : > { %v253_v23 = vmax.f32 %v252_v22, 1e-24 }
  0x76   : > { %785 = vrsqrt.f32 %v253_v23 }
  0x80   : > { %v786_v24 = vpop.eup %785 }
  0x81   : > { %v255_v25 = vmul.f32 %v786_v24, %v230_v2  ;;  %v256_v26 = vmul.f32 %v786_v24, %v231_v3  ;;  %v257_v27 = vmul.f32 %v786_v24, %v232_v4  ;;  %v258_v28 = vmul.f32 %v786_v24, %v233_v5 }
  0x83   : > { %v687_v29 = vpack.c.bf16 %v256_v26, %v255_v25  ;;  %v690_v30 = vpack.c.bf16 %v258_v28, %v257_v27 }
  0x85   : > { %688 = vmatpush3.bf16.msra.mxu0 %v687_v29 }
  0x86   : > { %689 = vmatprep.subr.bf16.mxu0 %v975_v0 }
  0x89   : > { %691 = vmatpush3.bf16.msra.mxu0 %v690_v30 }
  0x8c   : > { %673 = vmatmul.mubr.msk.f32.vlgmr.msra.gmra.mrb[0].mxu0 %vm259_vm2, %v234_v31 }
 0x15f   : > { %v329_v34 = vpop.f32.mrb[0].mxu0 }
 0x160   : > { %333 = vst.msk [vmem:[%s1179_s23] sm:$0xff] %vm239_vm3, %v329_v34  ;;  %v334_v35 = vmul.f32 14.285714, %v329_v34  ;;  %v674_v36 = vpop.f32.mrb[1].mxu0 }
 0x162   : > { %v335_v37 = vsel %vm239_vm3, %v334_v35, -inf }
 0x163   : > { %v336_v38 = vrot.slane %v335_v37, 4 }
 0x165   : > { %v337_v39 = vmax.f32 %v335_v37, %v336_v38 }
 0x167   : > { %v338_v40 = vrot.slane %v337_v39, 2 }
 0x169   : > { %v339_v41 = vmax.f32 %v337_v39, %v338_v40 }
 0x16b   : > { %v340_v42 = vrot.slane %v339_v41, 1 }
 0x16d   : > { %v341_v43 = vmax.f32 %v339_v41, %v340_v42 }
 0x16f   : > { %v342_v44 = vsub.f32 %v334_v35, %v341_v43 }
 0x171   : > { %v343_v45 = vmul.f32 1.442695, %v342_v44 }
 0x173   : > { %787 = vpow2.f32 %v343_v45 }
 0x17d   : > { %v788_v46 = vpop.eup %787 }
 0x17e   : > { %v345_v47 = vsel %vm239_vm3, %v788_v46, 0.0 }
 0x17f   : > { %v346_v48 = vrot.slane %v345_v47, 4 }
 0x181   : > { %v347_v49 = vadd.f32 %v346_v48, %v345_v47 }
 0x183   : > { %v348_v50 = vrot.slane %v347_v49, 2 }
 0x185   : > { %v349_v51 = vadd.f32 %v348_v50, %v347_v49 }
 0x187   : > { %v350_v52 = vrot.slane %v349_v51, 1 }
 0x189   : > { %v351_v53 = vadd.f32 %v350_v52, %v349_v51 }
 0x18b   : > { %789 = vrcp.f32 %v351_v53 }
 0x195   : > { %v790_v54 = vpop.eup %789 }
 0x196   : > { %v353_v55 = vmul.f32 %v790_v54, %v788_v46 }
 0x198   : > { %v354_v56 = vadd.f32 1e-07, %v353_v55 }
 0x19a   : > { %684 = vmatmul.mubr.msk.f32.vlgmr.msra.gmra.mrb[0].mxu1 %vm239_vm3, %v354_v56  ;;  %v363_v57 = vsel %vm239_vm3, %v354_v56, 0.0 }
 0x19b   : > { %364 = vadd.xlane.f32.xlu0 %v363_v57 }
 0x228   : > { %v365_v60 = vpop.xlane.xlu0 %364 }
 0x229   : > { %v366_v61 = vadd.f32 %v365_v60, %v362_v59 }
 0x22b   : > { %368 = vst.msk [vmem:[#allocation3] sm:$0xff] %vm360_vm1, %v366_v61 }
 0x232   : > { %v461_v62 = vld [vmem:[#allocation3] sm:$0xff] }
 0x233   : > { %791 = vrcp.f32 %v461_v62 }
 0x23d   : > { %v792_v63 = vpop.eup %791 }
 0x23e   : > { %465 = vperm.xlu0 %784, %v792_v63  }
 0x23f   : > { %864 = shalt.err (!%p861_p7)
}
 0x240   : > { %s865_s7 = scalar_lea.hbm %s1194_s22, 128  ;;  %s869_s30 = scalar_lea.hbm %s1276_s3, 256 }
 0x241   : > { %p866_p13 = scmp.ne.s32.totalorder %s1194_s22, %s865_s7  ;;  %p870_p12 = scmp.lt.u32.totalorder %s1194_s22, %s1276_s3 }
 0x242   : > { %p871_p4 = scmp.lt.u32.totalorder %s869_s30, %s865_s7  ;;  %p873_p8 = scmp.lt.u32.totalorder %s865_s7, %s1194_s22 }
 0x243   : > { %p867_p2 = pnand %p866_p13, %p1297_p10 }
 0x244   : > { %p872_p5 = por %p871_p4, %p870_p12 }
 0x245   : > { %p868_p6 = pneg %p867_p2 }
 0x246   : > { %p874_p11 = por %p873_p8, %p872_p5 }
 0x248   : > { %p875_p1 = pnand %p874_p11, %p868_p6 }
 0x24a   : > { %878 = shalt.err (!%p875_p1)
}
 0x24b   : > { %707 = dma.vmem_to_hbm [thread:$0]  (%p1297_p10), %s504_s5, 128, %s1194_s22, %s476_s20   ;;  %v369_v0 = vld [vmem:[#allocation2] sm:$0xff] }
 0x24c   : > { %s222_s18 = scalar_lea.vmem [#allocation9], %s639_s21  ;;  %s1223_s27 = scalar_lea.hbm %s1275_s2, %s649_s26 }
 0x24d   : > { %s489_s6 = sshll.u32 %s222_s18, 4  ;;  %s471_s22 = scalar_lea.sflag [#allocation6], %s1159_s9  ;;  %s1225_s6 = int_to_ptr.vmem [resolvable:$true] %s489_s6 }
 0x24e   : > { %s879_s5 = scalar_lea.vmem %s1225_s6, 128  ;;  %s980_s21 = smov [#allocation9]  }
 0x24f   : > { %p880_p0 = scmp.ne.s32.totalorder %s1225_s6, %s879_s5  ;;  %s883_s15 = sshll.u32 %s980_s21, 4  ;;  %s884_s15 = int_to_ptr.vmem [resolvable:$false] %s883_s15 }
 0x250   : > { %s885_s20 = scalar_lea.vmem %s884_s15, 256  ;;  %p886_p7 = scmp.lt.s32.totalorder %s1225_s6, %s884_s15 }
 0x251   : > { %p881_p9 = pnand %p880_p0, %p1297_p10  ;;  %p887_p13 = scmp.lt.s32.totalorder %s885_s20, %s879_s5 }
 0x253   : > { %p882_p3 = pneg %p881_p9  ;;  %p888_p2 = por %p887_p13, %p886_p7 }
 0x255   : > { %p889_p6 = pnand %p888_p2, %p882_p3 }
 0x26d   : > { %v451_v1 = vpop.f32.mrb[0].mxu1 }
 0x26e   : > { %v455_v2 = vadd.f32 %v451_v1, %v369_v0  ;;  %v685_v3 = vpop.f32.mrb[1].mxu1 }
 0x270   : > { %456 = vst.msk [vmem:[#allocation2] sm:$0xff] %vm259_vm2, %v455_v2 }
 0x277   : > { %v460_v4 = vld [vmem:[#allocation2] sm:$0xff] }
 0x2bd   : > { %v466_v5 = vpop.permute.xlu0 %465 }
 0x2be   : > { %v468_v6 = vmul.f32 %v466_v5, %v460_v4 }
 0x2c0   : > { %469 = vst.msk [vmem:[%s222_s18] sm:$0xff] %vm259_vm2, %v468_v6 }
 0x2c1   : > { %892 = shalt.err (!%p889_p6)
}
 0x2c2   : > { %s893_s9 = scalar_lea.hbm %s1223_s27, 128  ;;  %s897_s8 = scalar_lea.hbm %s1275_s2, 256 }
 0x2c3   : > { %p894_p12 = scmp.ne.s32.totalorder %s1223_s27, %s893_s9  ;;  %p898_p8 = scmp.lt.u32.totalorder %s1223_s27, %s1275_s2 }
 0x2c4   : > { %p899_p11 = scmp.lt.u32.totalorder %s897_s8, %s893_s9  ;;  %p901_p0 = scmp.lt.u32.totalorder %s893_s9, %s1223_s27 }
 0x2c5   : > { %p895_p4 = pnand %p894_p12, %p1297_p10 }
 0x2c6   : > { %p900_p1 = por %p899_p11, %p898_p8 }
 0x2c7   : > { %p896_p5 = pneg %p895_p4 }
 0x2c8   : > { %p902_p9 = por %p901_p0, %p900_p1 }
 0x2ca   : > { %p903_p3 = pnand %p902_p9, %p896_p5 }
 0x2cc   : > { %906 = shalt.err (!%p903_p3)
}
 0x2cd   : > { %706 = dma.vmem_to_hbm [thread:$0]  (%p1297_p10), %s1225_s6, 128, %s1223_s27, %s471_s22  }
 0x2ce PF: > { %s515_s23 = sand.u32 1, %s949_s12   ;;  %p1298_p7 = scmp.ne.s32.totalorder %s1287_s25, 0 }
 0x2cf   : > { %p1299_p13 = scmp.ge.s32.totalorder %s969_s17, 2  ;;  %s516_s29 = scalar_lea.sflag [#allocation6], %s515_s23 }
 0x2d1   : > { %p719_p2 = pnand %p1299_p13, %p1298_p7 }
 0x2d3   : > { %940 = dma.done.wait (!%p719_p2), %s516_s29, 128  }
 0x2d4   : > { %942 = vsyncadd (!%p719_p2), %s516_s29, 4294967168  ;;  %s525_s18 = scalar_lea.sflag [#allocation11], %s515_s23 }
 0x2d5   : > { %944 = dma.done.wait (!%p719_p2), %s525_s18, 128  }
 0x2d6   : > { %946 = vsyncadd (!%p719_p2), %s525_s18, 4294967168  ;;  %s24_s17 = sadd.s32 1, %s969_s17   ;;  %s1300_s12 = smov %s953_s13 }
 0x2d7   : > { %p21_p6 = scmp.ge.s32.totalorder %s24_s17, 4   ;;  %s1301_s13 = smov %s957_s14 }
 0x2d8   : > { %s1302_s14 = smov %s1120_s28  ;;  %s1303_s15 = smov %s965_s16 }
 0x2d9   : > { %s1304_s16 = smov %s1306_s4  ;;  %23 = sbr.rel (!%p21_p6) target bundleno = 9 (0x9), region = 103 }
 0x2e0   :  { %530 = vsyncpa [#allocation5], 1 }
 0x2e1   :  { %532 = vsyncpa [#allocation5 + $0x1], 1 }
 0x2e2   :  { %533 = vsyncpa [#allocation8], 1 }
 0x2e3   :  { %535 = vsyncpa [#allocation8 + $0x1], 1 }
 0x2e4   :  { %536 = vsyncpa [#allocation6], 1 }
 0x2e5   :  { %538 = vsyncpa [#allocation6 + $0x1], 1 }
 0x2e6   :  { %539 = vsyncpa [#allocation11], 1 }
 0x2e7   :  { %541 = vsyncpa [#allocation11 + $0x1], 1 }

</bundles_post_ra>
